<compile_context>
chip_gen: v7x
topology: tpu7x:2x2x1
jax: 0.10.0
libtpu: 0.0.40
codegen_flags: <defaults>
</compile_context>

<pallas_src>
import functools

import jax
import jax.numpy as jnp
from jax.experimental import pallas as pl
from jax.experimental.pallas import tpu as pltpu


def _round_up(a: int, m: int) -> int:
    return (a + m - 1) // m * m


def qccpn_kernel(x_ref, xr_ref, w_ref, b_ref, wr_ref, br_ref, ct_ref, cn_ref,
                 o_ref, *, gamma, feat, tb):
    # Linear + ReLU (MXU).  x_ref: [TB, D];  xr_ref: [3*TB, D] = the three
    # rotated views of this batch tile stacked along the row axis -> one matmul.
    h0 = jnp.maximum(
        jnp.dot(x_ref[...], w_ref[...], preferred_element_type=jnp.float32)
        + b_ref[...], 0.0)                                          # [TB, F]
    hr = jnp.maximum(
        jnp.dot(xr_ref[...], wr_ref[...], preferred_element_type=jnp.float32)
        + br_ref[...], 0.0)                                         # [3*TB, F]

    hs = (h0, hr[0:tb], hr[tb:2 * tb], hr[2 * tb:3 * tb])

    # ||h_all||^2 (VPU/XLU, small) and the cross term h_all @ centers^T (MXU),
    # accumulated over the 4 concatenated feature blocks.
    sq = jnp.zeros((tb, 1), dtype=jnp.float32)
    cross = jnp.zeros((tb, o_ref.shape[1]), dtype=jnp.float32)
    for i, h in enumerate(hs):
        sq = sq + jnp.sum(h * h, axis=-1, keepdims=True)            # [TB, 1]
        ct_blk = ct_ref[i * feat:(i + 1) * feat, :]                  # [F, C_pad]
        cross = cross + jnp.dot(h, ct_blk,
                                preferred_element_type=jnp.float32)  # [TB, C_pad]

    # ||h||^2 + ||c||^2 - 2 h.c ; clamp at 0 (cancellation can go slightly <0).
    d2 = jnp.maximum(sq + cn_ref[...] - 2.0 * cross, 0.0)
    o_ref[...] = jnp.sqrt(d2) * (-gamma)


def qccpn_forward(x, x90, x180, x270, W, b, Wr, br, centers, gamma,
                  *, block_b: int = 256):
    B, D_in = x.shape
    C, four_f = centers.shape
    feat = four_f // 4

    # Batch tile: multiple of 8 (sublane), capped for VMEM/pipelining.
    TB = min(block_b, _round_up(B, 8))
    B_pad = _round_up(B, TB)
    nb = B_pad // TB
    C_pad = _round_up(C, 128)   # lane-dense output

    f32 = jnp.float32
    x = x.astype(f32); x90 = x90.astype(f32)
    x180 = x180.astype(f32); x270 = x270.astype(f32)

    def pad_b(a):
        return jnp.pad(a, ((0, B_pad - B), (0, 0))) if B_pad != B else a

    xp = pad_b(x)                                                   # [B_pad, D]
    # Pack the three rotated views so each batch tile i owns a contiguous
    # [3*TB, D] row slab: [x90_tile_i ; x180_tile_i ; x270_tile_i].
    xr = jnp.stack([pad_b(x90), pad_b(x180), pad_b(x270)], axis=0)  # [3,B_pad,D]
    xr = (xr.reshape(3, nb, TB, D_in)
            .transpose(1, 0, 2, 3)
            .reshape(nb * 3 * TB, D_in))                            # [3*B_pad, D]

    # Centers: pad class dim to C_pad, pre-transpose to [4F, C_pad], and
    # precompute per-center squared norms [1, C_pad] (paid zero times in-kernel).
    centers_p = jnp.pad(centers.astype(f32), ((0, C_pad - C), (0, 0)))
    centers_t = centers_p.T                                         # [4F, C_pad]
    cnorm = jnp.sum(centers_p * centers_p, axis=1)[None, :]         # [1, C_pad]

    kern = functools.partial(qccpn_kernel, gamma=float(gamma), feat=feat, tb=TB)

    const = lambda i: (0, 0)   # resident operands: same block every grid step
    out_pad = pl.pallas_call(
        kern,
        out_shape=jax.ShapeDtypeStruct((B_pad, C_pad), f32),
        grid=(nb,),
        in_specs=[
            pl.BlockSpec((TB, D_in), lambda i: (i, 0)),       # x tile (streamed)
            pl.BlockSpec((3 * TB, D_in), lambda i: (i, 0)),   # rotated tile (streamed)
            pl.BlockSpec((D_in, feat), const),                # W        (resident)
            pl.BlockSpec((1, feat), const),                   # b        (resident)
            pl.BlockSpec((D_in, feat), const),                # W_rot    (resident)
            pl.BlockSpec((1, feat), const),                   # b_rot    (resident)
            pl.BlockSpec((4 * feat, C_pad), const),           # centers^T(resident)
            pl.BlockSpec((1, C_pad), const),                  # ||c||^2  (resident)
        ],
        out_specs=pl.BlockSpec((TB, C_pad), lambda i: (i, 0)),
        compiler_params=pltpu.CompilerParams(
            dimension_semantics=("parallel",),
            vmem_limit_bytes=32 * 1024 * 1024,
        ),
    )(xp, xr, W.astype(f32), b.astype(f32), Wr.astype(f32), br.astype(f32),
      centers_t, cnorm)

    return out_pad[:B, :C]


def qccpn_reference(x, x90, x180, x270, W, b, Wr, br, centers, gamma):
    h0 = jax.nn.relu(x @ W + b)
    h1 = jax.nn.relu(x90 @ Wr + br)
    h2 = jax.nn.relu(x180 @ Wr + br)
    h3 = jax.nn.relu(x270 @ Wr + br)
    x_all = jnp.concatenate([h0, h1, h2, h3], axis=1)               # [B, 4F]
    diff = x_all[:, None, :] - centers[None, :, :]                  # [B, C, 4F]
    dist = jnp.sqrt(jnp.sum(diff * diff, axis=-1))                  # [B, C]
    return dist * (-gamma)


if __name__ == "__main__":
    # Small shapes consistent with the module (n_class, feature_dim, input_feature).
    B = 8
    D_IN = 32        # input_feature
    FEAT = 128       # feature_dim (lane-aligned, multiple of 8 required)
    N_CLASS = 16
    GAMMA = 0.1

    key = jax.random.PRNGKey(0)
    ks = jax.random.split(key, 10)
    x = jax.random.normal(ks[0], (B, D_IN), dtype=jnp.float32)
    x90 = jax.random.normal(ks[1], (B, D_IN), dtype=jnp.float32)
    x180 = jax.random.normal(ks[2], (B, D_IN), dtype=jnp.float32)
    x270 = jax.random.normal(ks[3], (B, D_IN), dtype=jnp.float32)

    # Deterministic parameter init (synthetic, not a checkpoint).
    W = jax.random.normal(ks[4], (D_IN, FEAT), dtype=jnp.float32) * 0.1
    b = jax.random.normal(ks[5], (1, FEAT), dtype=jnp.float32) * 0.1
    Wr = jax.random.normal(ks[6], (D_IN, FEAT), dtype=jnp.float32) * 0.1
    br = jax.random.normal(ks[7], (1, FEAT), dtype=jnp.float32) * 0.1
    centers = jax.random.normal(ks[8], (N_CLASS, 4 * FEAT), dtype=jnp.float32)

    out = qccpn_forward(x, x90, x180, x270, W, b, Wr, br, centers, GAMMA)
    out = jax.block_until_ready(out)

    ref = qccpn_reference(x, x90, x180, x270, W, b, Wr, br, centers, GAMMA)
    assert out.shape == (B, N_CLASS)
    # Tolerance slightly relaxed: the ||h||^2+||c||^2-2h.c expansion accumulates
    # differently than the direct (h-c)^2 reference (both f32).
    assert jnp.allclose(out, ref, atol=2e-3, rtol=2e-3), "mismatch vs reference"

    print("KERNEL_OK")
</pallas_src>

<mosaic_0001>
module attributes {stable_mosaic.version = 11 : i64} {
  func.func @qccpn_kernel(%arg0: i32, %arg1: memref<8x32xf32, #tpu.memory_space<vmem>>, %arg2: memref<24x32xf32, #tpu.memory_space<vmem>>, %arg3: memref<32x128xf32, #tpu.memory_space<vmem>>, %arg4: memref<1x128xf32, #tpu.memory_space<vmem>>, %arg5: memref<32x128xf32, #tpu.memory_space<vmem>>, %arg6: memref<1x128xf32, #tpu.memory_space<vmem>>, %arg7: memref<512x128xf32, #tpu.memory_space<vmem>>, %arg8: memref<1x128xf32, #tpu.memory_space<vmem>>, %arg9: memref<8x128xf32, #tpu.memory_space<vmem>>) attributes {dimension_semantics = [#tpu.dimension_semantics<parallel>], iteration_bounds = array<i64: 1>, scalar_prefetch = 0 : i64, scratch_operands = 0 : i64, tpu.core_type = #tpu.core_type<tc>, window_params = [{transform_indices = @transform_0, window_bounds = array<i64: 8, 32>}, {transform_indices = @transform_1, window_bounds = array<i64: 24, 32>}, {pipeline_mode = #tpu.pipeline_mode<synchronous>, transform_indices = @transform_2, window_bounds = array<i64: 32, 128>}, {pipeline_mode = #tpu.pipeline_mode<synchronous>, transform_indices = @transform_3, window_bounds = array<i64: 1, 128>}, {pipeline_mode = #tpu.pipeline_mode<synchronous>, transform_indices = @transform_4, window_bounds = array<i64: 32, 128>}, {pipeline_mode = #tpu.pipeline_mode<synchronous>, transform_indices = @transform_5, window_bounds = array<i64: 1, 128>}, {pipeline_mode = #tpu.pipeline_mode<synchronous>, transform_indices = @transform_6, window_bounds = array<i64: 512, 128>}, {pipeline_mode = #tpu.pipeline_mode<synchronous>, transform_indices = @transform_7, window_bounds = array<i64: 1, 128>}, {transform_indices = @transform_8, window_bounds = array<i64: 8, 128>}]} {
    %c0 = arith.constant 0 : index
    %c0_0 = arith.constant 0 : index
    %0 = vector.load %arg1[%c0, %c0_0] : memref<8x32xf32, #tpu.memory_space<vmem>>, vector<8x32xf32>
    %c0_1 = arith.constant 0 : index
    %c0_2 = arith.constant 0 : index
    %1 = vector.load %arg3[%c0_1, %c0_2] : memref<32x128xf32, #tpu.memory_space<vmem>>, vector<32x128xf32>
    %cst = arith.constant dense<0.000000e+00> : vector<8x128xf32>
    %2 = tpu.matmul %0, %1, %cst {dimension_numbers = #tpu.dot_dimension_numbers<[1], [0], [0], [1], [0, 0, 1, 1], [], []>} : vector<8x32xf32>, vector<32x128xf32>, vector<8x128xf32> -> vector<8x128xf32>
    %c0_3 = arith.constant 0 : index
    %c0_4 = arith.constant 0 : index
    %3 = vector.load %arg4[%c0_3, %c0_4] : memref<1x128xf32, #tpu.memory_space<vmem>>, vector<1x128xf32>
    %4 = vector.broadcast %3 : vector<1x128xf32> to vector<8x128xf32>
    %5 = arith.addf %2, %4 : vector<8x128xf32>
    %cst_5 = arith.constant 0.000000e+00 : f32
    %6 = vector.broadcast %cst_5 : f32 to vector<8x128xf32>
    %7 = arith.maximumf %5, %6 : vector<8x128xf32>
    %c0_6 = arith.constant 0 : index
    %c0_7 = arith.constant 0 : index
    %8 = vector.load %arg2[%c0_6, %c0_7] : memref<24x32xf32, #tpu.memory_space<vmem>>, vector<24x32xf32>
    %c0_8 = arith.constant 0 : index
    %c0_9 = arith.constant 0 : index
    %9 = vector.load %arg5[%c0_8, %c0_9] : memref<32x128xf32, #tpu.memory_space<vmem>>, vector<32x128xf32>
    %cst_10 = arith.constant dense<0.000000e+00> : vector<24x128xf32>
    %10 = tpu.matmul %8, %9, %cst_10 {dimension_numbers = #tpu.dot_dimension_numbers<[1], [0], [0], [1], [0, 0, 1, 1], [], []>} : vector<24x32xf32>, vector<32x128xf32>, vector<24x128xf32> -> vector<24x128xf32>
    %c0_11 = arith.constant 0 : index
    %c0_12 = arith.constant 0 : index
    %11 = vector.load %arg6[%c0_11, %c0_12] : memref<1x128xf32, #tpu.memory_space<vmem>>, vector<1x128xf32>
    %12 = vector.broadcast %11 : vector<1x128xf32> to vector<24x128xf32>
    %13 = arith.addf %10, %12 : vector<24x128xf32>
    %cst_13 = arith.constant 0.000000e+00 : f32
    %14 = vector.broadcast %cst_13 : f32 to vector<24x128xf32>
    %15 = arith.maximumf %13, %14 : vector<24x128xf32>
    %16 = vector.extract_strided_slice %15 {offsets = [0, 0], sizes = [8, 128], strides = [1, 1]} : vector<24x128xf32> to vector<8x128xf32>
    %17 = vector.extract_strided_slice %15 {offsets = [8, 0], sizes = [8, 128], strides = [1, 1]} : vector<24x128xf32> to vector<8x128xf32>
    %18 = vector.extract_strided_slice %15 {offsets = [16, 0], sizes = [8, 128], strides = [1, 1]} : vector<24x128xf32> to vector<8x128xf32>
    %cst_14 = arith.constant 0.000000e+00 : f32
    %19 = vector.broadcast %cst_14 : f32 to vector<8x1xf32>
    %cst_15 = arith.constant 0.000000e+00 : f32
    %20 = vector.broadcast %cst_15 : f32 to vector<8x128xf32>
    %21 = arith.mulf %7, %7 : vector<8x128xf32>
    %cst_16 = arith.constant dense<0.000000e+00> : vector<8xf32>
    %22 = vector.multi_reduction <add>, %21, %cst_16 [1] : vector<8x128xf32> to vector<8xf32>
    %23 = vector.shape_cast %22 : vector<8xf32> to vector<8x1xf32>
    %24 = arith.addf %19, %23 : vector<8x1xf32>
    %c0_17 = arith.constant 0 : index
    %c0_18 = arith.constant 0 : index
    %25 = vector.load %arg7[%c0_17, %c0_18] : memref<512x128xf32, #tpu.memory_space<vmem>>, vector<128x128xf32>
    %cst_19 = arith.constant dense<0.000000e+00> : vector<8x128xf32>
    %26 = tpu.matmul %7, %25, %cst_19 {dimension_numbers = #tpu.dot_dimension_numbers<[1], [0], [0], [1], [0, 0, 1, 1], [], []>} : vector<8x128xf32>, vector<128x128xf32>, vector<8x128xf32> -> vector<8x128xf32>
    %27 = arith.addf %20, %26 : vector<8x128xf32>
    %28 = arith.mulf %16, %16 : vector<8x128xf32>
    %cst_20 = arith.constant dense<0.000000e+00> : vector<8xf32>
    %29 = vector.multi_reduction <add>, %28, %cst_20 [1] : vector<8x128xf32> to vector<8xf32>
    %30 = vector.shape_cast %29 : vector<8xf32> to vector<8x1xf32>
    %31 = arith.addf %24, %30 : vector<8x1xf32>
    %c128 = arith.constant 128 : index
    %c0_21 = arith.constant 0 : index
    %32 = vector.load %arg7[%c128, %c0_21] : memref<512x128xf32, #tpu.memory_space<vmem>>, vector<128x128xf32>
    %cst_22 = arith.constant dense<0.000000e+00> : vector<8x128xf32>
    %33 = tpu.matmul %16, %32, %cst_22 {dimension_numbers = #tpu.dot_dimension_numbers<[1], [0], [0], [1], [0, 0, 1, 1], [], []>} : vector<8x128xf32>, vector<128x128xf32>, vector<8x128xf32> -> vector<8x128xf32>
    %34 = arith.addf %27, %33 : vector<8x128xf32>
    %35 = arith.mulf %17, %17 : vector<8x128xf32>
    %cst_23 = arith.constant dense<0.000000e+00> : vector<8xf32>
    %36 = vector.multi_reduction <add>, %35, %cst_23 [1] : vector<8x128xf32> to vector<8xf32>
    %37 = vector.shape_cast %36 : vector<8xf32> to vector<8x1xf32>
    %38 = arith.addf %31, %37 : vector<8x1xf32>
    %c256 = arith.constant 256 : index
    %c0_24 = arith.constant 0 : index
    %39 = vector.load %arg7[%c256, %c0_24] : memref<512x128xf32, #tpu.memory_space<vmem>>, vector<128x128xf32>
    %cst_25 = arith.constant dense<0.000000e+00> : vector<8x128xf32>
    %40 = tpu.matmul %17, %39, %cst_25 {dimension_numbers = #tpu.dot_dimension_numbers<[1], [0], [0], [1], [0, 0, 1, 1], [], []>} : vector<8x128xf32>, vector<128x128xf32>, vector<8x128xf32> -> vector<8x128xf32>
    %41 = arith.addf %34, %40 : vector<8x128xf32>
    %42 = arith.mulf %18, %18 : vector<8x128xf32>
    %cst_26 = arith.constant dense<0.000000e+00> : vector<8xf32>
    %43 = vector.multi_reduction <add>, %42, %cst_26 [1] : vector<8x128xf32> to vector<8xf32>
    %44 = vector.shape_cast %43 : vector<8xf32> to vector<8x1xf32>
    %45 = arith.addf %38, %44 : vector<8x1xf32>
    %c384 = arith.constant 384 : index
    %c0_27 = arith.constant 0 : index
    %46 = vector.load %arg7[%c384, %c0_27] : memref<512x128xf32, #tpu.memory_space<vmem>>, vector<128x128xf32>
    %cst_28 = arith.constant dense<0.000000e+00> : vector<8x128xf32>
    %47 = tpu.matmul %18, %46, %cst_28 {dimension_numbers = #tpu.dot_dimension_numbers<[1], [0], [0], [1], [0, 0, 1, 1], [], []>} : vector<8x128xf32>, vector<128x128xf32>, vector<8x128xf32> -> vector<8x128xf32>
    %48 = arith.addf %41, %47 : vector<8x128xf32>
    %c0_29 = arith.constant 0 : index
    %c0_30 = arith.constant 0 : index
    %49 = vector.load %arg8[%c0_29, %c0_30] : memref<1x128xf32, #tpu.memory_space<vmem>>, vector<1x128xf32>
    %50 = vector.broadcast %45 : vector<8x1xf32> to vector<8x128xf32>
    %51 = vector.broadcast %49 : vector<1x128xf32> to vector<8x128xf32>
    %52 = arith.addf %50, %51 : vector<8x128xf32>
    %cst_31 = arith.constant 2.000000e+00 : f32
    %53 = vector.broadcast %cst_31 : f32 to vector<8x128xf32>
    %54 = arith.mulf %53, %48 : vector<8x128xf32>
    %55 = arith.subf %52, %54 : vector<8x128xf32>
    %cst_32 = arith.constant 0.000000e+00 : f32
    %56 = vector.broadcast %cst_32 : f32 to vector<8x128xf32>
    %57 = arith.maximumf %55, %56 : vector<8x128xf32>
    %58 = math.sqrt %57 : vector<8x128xf32>
    %cst_33 = arith.constant -1.000000e-01 : f32
    %59 = vector.broadcast %cst_33 : f32 to vector<8x128xf32>
    %60 = arith.mulf %58, %59 : vector<8x128xf32>
    %c0_34 = arith.constant 0 : index
    %c0_35 = arith.constant 0 : index
    %61 = vector.load %arg9[%c0_34, %c0_35] : memref<8x128xf32, #tpu.memory_space<vmem>>, vector<8x128xf32>
    tpu.vector_store %arg9[%c0_34, %c0_35], %60 {strides = array<i32>} : memref<8x128xf32, #tpu.memory_space<vmem>>, vector<8x128xf32>,
    return
  }
  func.func @transform_0(%arg0: i32) -> (i32, i32) {
    %c0_i32 = arith.constant 0 : i32
    %c0_i32_0 = arith.constant 0 : i32
    return %arg0, %c0_i32 : i32, i32
  }
  func.func @transform_1(%arg0: i32) -> (i32, i32) {
    %c0_i32 = arith.constant 0 : i32
    %c0_i32_0 = arith.constant 0 : i32
    return %arg0, %c0_i32 : i32, i32
  }
  func.func @transform_2(%arg0: i32) -> (i32, i32) {
    %c0_i32 = arith.constant 0 : i32
    %c0_i32_0 = arith.constant 0 : i32
    %c0_i32_1 = arith.constant 0 : i32
    return %c0_i32, %c0_i32_0 : i32, i32
  }
  func.func @transform_3(%arg0: i32) -> (i32, i32) {
    %c0_i32 = arith.constant 0 : i32
    %c0_i32_0 = arith.constant 0 : i32
    %c0_i32_1 = arith.constant 0 : i32
    return %c0_i32, %c0_i32_0 : i32, i32
  }
  func.func @transform_4(%arg0: i32) -> (i32, i32) {
    %c0_i32 = arith.constant 0 : i32
    %c0_i32_0 = arith.constant 0 : i32
    %c0_i32_1 = arith.constant 0 : i32
    return %c0_i32, %c0_i32_0 : i32, i32
  }
  func.func @transform_5(%arg0: i32) -> (i32, i32) {
    %c0_i32 = arith.constant 0 : i32
    %c0_i32_0 = arith.constant 0 : i32
    %c0_i32_1 = arith.constant 0 : i32
    return %c0_i32, %c0_i32_0 : i32, i32
  }
  func.func @transform_6(%arg0: i32) -> (i32, i32) {
    %c0_i32 = arith.constant 0 : i32
    %c0_i32_0 = arith.constant 0 : i32
    %c0_i32_1 = arith.constant 0 : i32
    return %c0_i32, %c0_i32_0 : i32, i32
  }
  func.func @transform_7(%arg0: i32) -> (i32, i32) {
    %c0_i32 = arith.constant 0 : i32
    %c0_i32_0 = arith.constant 0 : i32
    %c0_i32_1 = arith.constant 0 : i32
    return %c0_i32, %c0_i32_0 : i32, i32
  }
  func.func @transform_8(%arg0: i32) -> (i32, i32) {
    %c0_i32 = arith.constant 0 : i32
    %c0_i32_0 = arith.constant 0 : i32
    return %arg0, %c0_i32 : i32, i32
  }
}

</mosaic_0001>

<bundles_post_ra>
// kernel: tpu_custom_call.1
= control target key start
LH: loop header
LB: loop body
LE: loop exit
PB: predicated region body
PF: predicated region fallthrough
CT: control target
= control target key end

     0   :  { %13 = vsyncpa [#allocation3], 0  ;;  %s1424_s0 = inlined_call_operand.hbm [shape: f32[8,32], index: 0, kind: input, shape index: {}]   ;;  %s1425_s1 = inlined_call_operand.hbm [shape: f32[24,32], index: 1, kind: input, shape index: {}]   ;;  %s1426_s2 = inlined_call_operand.hbm [shape: f32[32,128], index: 2, kind: input, shape index: {}]   ;;  %s1427_s3 = inlined_call_operand.vmem [shape: f32[1,128], index: 3, kind: input, shape index: {}]   ;;  %s1428_s4 = inlined_call_operand.hbm [shape: f32[32,128], index: 4, kind: input, shape index: {}]   ;;  %s1429_s5 = inlined_call_operand.vmem [shape: f32[1,128], index: 5, kind: input, shape index: {}]   ;;  %s1430_s6 = inlined_call_operand.hbm [shape: f32[512,128], index: 6, kind: input, shape index: {}]   ;;  %s1431_s7 = inlined_call_operand.vmem [shape: f32[1,128], index: 7, kind: input, shape index: {}]   ;;  %s1432_s8 = inlined_call_operand.hbm [shape: f32[8,128], index: 8, kind: output, shape index: {}]  }
   0x1   :  { %14 = vsyncpa [#allocation6], 0 }
   0x2   :  { %15 = vsyncpa [#allocation9], 0 }
   0x3   :  { %16 = vsyncpa [#allocation4], 0  ;;  %s1209_s27 = smov [#allocation5]   ;;  %s1069_s9 = scalar_lea.hbm %s1425_s1, 384 }
   0x4   :  { %s32_s28 = sshll.u32 %s1209_s27, 4  ;;  %p1070_p0 = scmp.ne.s32.totalorder %s1425_s1, %s1069_s9  ;;  %s33_s28 = int_to_ptr.vmem [resolvable:$true] %s32_s28 }
   0x5   :  { %p1073_p1 = scmp.lt.u32.totalorder %s1069_s9, %s1425_s1 }
   0x7   :  { %p1075_p2 = pnand %p1073_p1, %p1070_p0 }
   0x9   :  { %1078 = shalt.err (!%p1075_p2)
}
   0xa   :  { %s1079_s14 = scalar_lea.vmem %s33_s28, 384  ;;  %p1084_p4 = scmp.lt.s32.totalorder %s33_s28, %s33_s28 }
   0xb   :  { %p1080_p3 = scmp.ne.s32.totalorder %s33_s28, %s1079_s14  ;;  %p1085_p5 = scmp.lt.s32.totalorder %s1079_s14, %s1079_s14 }
   0xd   :  { %p1086_p6 = por %p1085_p5, %p1084_p4 }
   0xf   :  { %p1087_p7 = pnand %p1086_p6, %p1080_p3 }
  0x11   :  { %1090 = shalt.err (!%p1087_p7)
}
  0x12   :  { %s1210_s15 = smov 128   ;;  %s1211_s16 = smov 8  }
  0x13   :  { %38 = dma.hbm_to_vmem [thread:$0]  %s1425_s1, 384, %s33_s28, [#allocation6], %s1210_s15, %s1210_s15, %s1211_s16  }
  0x14   :  { %s1212_s19 = smov [#allocation8]   ;;  %s1213_s21 = smov [#allocation2]  }
  0x15   :  { %s58_s20 = sshll.u32 %s1212_s19, 4  ;;  %s23_s22 = sshll.u32 %s1213_s21, 4  ;;  %s59_s20 = int_to_ptr.vmem [resolvable:$true] %s58_s20  ;;  %s24_s22 = int_to_ptr.vmem [resolvable:$true] %s23_s22 }
  0x16   :  { %s1091_s25 = scalar_lea.hbm %s1428_s4, 512 }
  0x17   :  { %p1092_p8 = scmp.ne.s32.totalorder %s1428_s4, %s1091_s25  ;;  %p1095_p9 = scmp.lt.u32.totalorder %s1091_s25, %s1428_s4 }
  0x19   :  { %p1097_p10 = pnand %p1095_p9, %p1092_p8 }
  0x1b   :  { %1100 = shalt.err (!%p1097_p10)
}
  0x1c   :  { %s1101_s1 = scalar_lea.vmem %s59_s20, 512  ;;  %p1106_p12 = scmp.lt.s32.totalorder %s59_s20, %s59_s20 }
  0x1d   :  { %p1102_p11 = scmp.ne.s32.totalorder %s59_s20, %s1101_s1  ;;  %p1107_p13 = scmp.lt.s32.totalorder %s1101_s1, %s1101_s1 }
  0x1f   :  { %p1108_p0 = por %p1107_p13, %p1106_p12 }
  0x21   :  { %p1109_p1 = pnand %p1108_p0, %p1102_p11 }
  0x23   :  { %1112 = shalt.err (!%p1109_p1)
}
  0x24   :  { %64 = dma.hbm_to_vmem [thread:$0]  %s1428_s4, 512, %s59_s20, [#allocation9], %s1210_s15, %s1210_s15, %s1211_s16  }
  0x25   :  { %s1113_s12 = scalar_lea.hbm %s1424_s0, 128 }
  0x26   :  { %p1114_p2 = scmp.ne.s32.totalorder %s1424_s0, %s1113_s12  ;;  %p1117_p3 = scmp.lt.u32.totalorder %s1113_s12, %s1424_s0 }
  0x28   :  { %p1119_p4 = pnand %p1117_p3, %p1114_p2 }
  0x2a   :  { %1122 = shalt.err (!%p1119_p4)
}
  0x2b   :  { %s1123_s19 = scalar_lea.vmem %s24_s22, 128  ;;  %p1128_p6 = scmp.lt.s32.totalorder %s24_s22, %s24_s22 }
  0x2c   :  { %p1124_p5 = scmp.ne.s32.totalorder %s24_s22, %s1123_s19  ;;  %p1129_p7 = scmp.lt.s32.totalorder %s1123_s19, %s1123_s19 }
  0x2e   :  { %p1130_p8 = por %p1129_p7, %p1128_p6 }
  0x30   :  { %p1131_p9 = pnand %p1130_p8, %p1124_p5 }
  0x32   :  { %1134 = shalt.err (!%p1131_p9)
}
  0x33   :  { %26 = dma.hbm_to_vmem [thread:$0]  %s1424_s0, 128, %s24_s22, [#allocation3]  }
  0x34   :  { %s1214_s21 = smov [#allocation7]   ;;  %s1215_s24 = smov [#allocation10]  }
  0x35   :  { %s44_s23 = sshll.u32 %s1214_s21, 4  ;;  %s72_s25 = sshll.u32 %s1215_s24, 4  ;;  %s45_s23 = int_to_ptr.vmem [resolvable:$true] %s44_s23  ;;  %s73_s25 = int_to_ptr.vmem [resolvable:$true] %s72_s25 }
  0x36   :  { %s1135_s29 = scalar_lea.hbm %s1426_s2, 512 }
  0x37   :  { %p1136_p10 = scmp.ne.s32.totalorder %s1426_s2, %s1135_s29  ;;  %p1139_p11 = scmp.lt.u32.totalorder %s1135_s29, %s1426_s2 }
  0x39   :  { %p1141_p12 = pnand %p1139_p11, %p1136_p10 }
  0x3b   :  { %1144 = shalt.err (!%p1141_p12)
}
  0x3c   :  { %s1145_s0 = scalar_lea.vmem %s45_s23, 512  ;;  %p1150_p0 = scmp.lt.s32.totalorder %s45_s23, %s45_s23 }
  0x3d   :  { %p1146_p13 = scmp.ne.s32.totalorder %s45_s23, %s1145_s0  ;;  %p1151_p1 = scmp.lt.s32.totalorder %s1145_s0, %s1145_s0 }
  0x3f   :  { %p1152_p2 = por %p1151_p1, %p1150_p0 }
  0x41   :  { %p1153_p3 = pnand %p1152_p2, %p1146_p13 }
  0x43   :  { %1156 = shalt.err (!%p1153_p3)
}
  0x44   :  { %50 = dma.hbm_to_vmem [thread:$0]  %s1426_s2, 512, %s45_s23, [#allocation6], %s1210_s15, %s1210_s15, %s1211_s16  }
  0x45   :  { %s1157_s13 = scalar_lea.hbm %s1430_s6, 8192 }
  0x46   :  { %p1158_p4 = scmp.ne.s32.totalorder %s1430_s6, %s1157_s13  ;;  %p1161_p5 = scmp.lt.u32.totalorder %s1157_s13, %s1430_s6 }
  0x48   :  { %p1163_p6 = pnand %p1161_p5, %p1158_p4 }
  0x4a   :  { %1166 = shalt.err (!%p1163_p6)
}
  0x4b   :  { %s1167_s4 = scalar_lea.vmem %s73_s25, 8192  ;;  %p1172_p8 = scmp.lt.s32.totalorder %s73_s25, %s73_s25 }
  0x4c   :  { %p1168_p7 = scmp.ne.s32.totalorder %s73_s25, %s1167_s4  ;;  %p1173_p9 = scmp.lt.s32.totalorder %s1167_s4, %s1167_s4 }
  0x4e   :  { %p1174_p10 = por %p1173_p9, %p1172_p8 }
  0x50   :  { %p1175_p11 = pnand %p1174_p10, %p1168_p7 }
  0x52   :  { %1178 = shalt.err (!%p1175_p11)
}
  0x53   :  { %78 = dma.hbm_to_vmem [thread:$0]  %s1430_s6, 8192, %s73_s25, [#allocation9], %s1210_s15, %s1210_s15, %s1211_s16  }
  0x54   :  { %1201 = dma.done.wait [#allocation3], 128  }
  0x55   :  { %1202 = vsyncadd [#allocation3], 4294967168 }
  0x56   :  { %1203 = dma.done.wait [#allocation6], 896  }
  0x57   :  { %1204 = vsyncadd [#allocation6], 4294966400 }
  0x58   :  { %1205 = dma.done.wait [#allocation9], 8704  }
  0x59   :  { %1206 = vsyncadd [#allocation9], 4294958592  ;;  %v1216_v0 = vmov 0.0|0.0   ;;  %vm1217_vm0 = vmmov 0   ;;  %v1218_v1 = vmov 0.0   ;;  %v97_v2 = vld [vmem:[#allocation7] sm:$0xff] }
  0x5a   :  { %943 = vmatprep.subr.bf16.mxu0 %v1216_v0  ;;  %949 = vmatprep.subr.bf16.mxu1 %v1216_v0  ;;  %v98_v3 = vld [vmem:[#allocation7 + $0x8] sm:$0xff]  ;;  %v186_v4 = vld [vmem:[#allocation8] sm:$0xff]  ;;  %v99_v7 = vld [vmem:[#allocation7 + $0x10] sm:$0xff]  ;;  %vm108_vm1 = vcmask 261120   ;;  %s1219_s23 = smov [#allocation11]  }
  0x5b   :  { %783 = vmatprep.mubr.msk.f32.mxu0 %vm1217_vm0, %v1218_v1  ;;  %794 = vmatprep.mubr.msk.f32.mxu1 %vm1217_vm0, %v1218_v1  ;;  %v944_v5 = vpack.c.bf16 %v98_v3, %v97_v2  ;;  %v187_v6 = vld [vmem:[#allocation8 + $0x8] sm:$0xff]  ;;  %v100_v8 = vld [vmem:[#allocation7 + $0x18] sm:$0xff]  ;;  %v188_v10 = vld [vmem:[#allocation8 + $0x10] sm:$0xff]  ;;  %s677_s24 = sshll.u32 %s1219_s23, 4  ;;  %s678_s24 = int_to_ptr.vmem [resolvable:$true] %s677_s24 }
  0x5c   :  { %v950_v9 = vpack.c.bf16 %v187_v6, %v186_v4  ;;  %v189_v11 = vld [vmem:[#allocation8 + $0x18] sm:$0xff]  ;;  %v947_v12 = vpack.c.bf16 %v100_v8, %v99_v7  ;;  %v313_v14 = vld [vmem:[#allocation10 + $0x80] sm:$0xff]  ;;  %v314_v15 = vld [vmem:[#allocation10 + $0x88] sm:$0xff]  ;;  %p1184_p13 = scmp.lt.s32.totalorder %s678_s24, %s678_s24 }
  0x5d   :  { %945 = vmatpush3.bf16.msra.mxu0 %v944_v5  ;;  %v953_v13 = vpack.c.bf16 %v189_v11, %v188_v10  ;;  %v473_v16 = vld [vmem:[#allocation10 + $0x100] sm:$0xff]  ;;  %v474_v17 = vld [vmem:[#allocation10 + $0x108] sm:$0xff]  ;;  %v956_v21 = vpack.c.bf16 %v314_v15, %v313_v14  ;;  %v475_v22 = vld [vmem:[#allocation10 + $0x110] sm:$0xff] }
  0x5e   :  { %951 = vmatpush3.bf16.msra.mxu1 %v950_v9  ;;  %946 = vmatprep.subr.bf16.mxu0 %v1216_v0  ;;  %v96_v18 = vld [vmem:[#allocation2] sm:$0xff]  ;;  %v1004_v19 = vpack.c.bf16 %v474_v17, %v473_v16  ;;  %v183_v20 = vld [vmem:[#allocation5] sm:$0xff]  ;;  %v476_v23 = vld [vmem:[#allocation10 + $0x118] sm:$0xff] }
  0x5f   :  { %952 = vmatprep.subr.bf16.mxu1 %v1216_v0  ;;  %v315_v24 = vld [vmem:[#allocation10 + $0x90] sm:$0xff]  ;;  %v316_v25 = vld [vmem:[#allocation10 + $0x98] sm:$0xff]  ;;  %v1007_v26 = vpack.c.bf16 %v476_v23, %v475_v22  ;;  %v477_v29 = vld [vmem:[#allocation10 + $0x120] sm:$0xff] }
  0x60   :  { %v184_v27 = vld [vmem:[#allocation5 + $0x8] sm:$0xff]  ;;  %v959_v28 = vpack.c.bf16 %v316_v25, %v315_v24  ;;  %v478_v30 = vld [vmem:[#allocation10 + $0x128] sm:$0xff]  ;;  %v317_v31 = vld [vmem:[#allocation10 + $0xa0] sm:$0xff] }
  0x61   :  { %948 = vmatpush3.bf16.msra.mxu0 %v947_v12  ;;  %v318_v32 = vld [vmem:[#allocation10 + $0xa8] sm:$0xff]  ;;  %v1010_v33 = vpack.c.bf16 %v478_v30, %v477_v29  ;;  %v185_v34 = vld [vmem:[#allocation5 + $0x10] sm:$0xff]  ;;  %v479_v36 = vld [vmem:[#allocation10 + $0x130] sm:$0xff] }
  0x62   :  { %954 = vmatpush3.bf16.msra.mxu1 %v953_v13  ;;  %1003 = vmatprep.subr.bf16.mxu0 %v1216_v0  ;;  %v962_v35 = vpack.c.bf16 %v318_v32, %v317_v31  ;;  %v480_v37 = vld [vmem:[#allocation10 + $0x138] sm:$0xff]  ;;  %v319_v38 = vld [vmem:[#allocation10 + $0xb0] sm:$0xff]  ;;  %v481_v42 = vld [vmem:[#allocation10 + $0x140] sm:$0xff] }
  0x63   :  { %955 = vmatprep.subr.bf16.mxu1 %v1216_v0  ;;  %v320_v39 = vld [vmem:[#allocation10 + $0xb8] sm:$0xff]  ;;  %v1013_v40 = vpack.c.bf16 %v480_v37, %v479_v36  ;;  %v482_v43 = vld [vmem:[#allocation10 + $0x148] sm:$0xff]  ;;  %v321_v44 = vld [vmem:[#allocation10 + $0xc0] sm:$0xff] }
  0x64   :  { %784 = vmatmul.mubr.msk.f32.vlgmr.msra.gmra.mrb[0].mxu0 %vm108_vm1, %v96_v18  ;;  %v965_v41 = vpack.c.bf16 %v320_v39, %v319_v38  ;;  %v322_v45 = vld [vmem:[#allocation10 + $0xc8] sm:$0xff]  ;;  %v1016_v46 = vpack.c.bf16 %v482_v43, %v481_v42  ;;  %v483_v48 = vld [vmem:[#allocation10 + $0x150] sm:$0xff]  ;;  %v484_v49 = vld [vmem:[#allocation10 + $0x158] sm:$0xff] }
  0x65   :  { %795 = vmatmul.mubr.msk.f32.vlgmr.msra.gmra.mrb[0].mxu1 %vm108_vm1, %v183_v20  ;;  %1005 = vmatpush3.bf16.msra.mxu0 %v1004_v19  ;;  %v968_v47 = vpack.c.bf16 %v322_v45, %v321_v44  ;;  %v323_v50 = vld [vmem:[#allocation10 + $0xd0] sm:$0xff]  ;;  %v324_v51 = vld [vmem:[#allocation10 + $0xd8] sm:$0xff]  ;;  %v1019_v52 = vpack.c.bf16 %v484_v49, %v483_v48  ;;  %v325_v54 = vld [vmem:[#allocation10 + $0xe0] sm:$0xff] }
  0x66   :  { %797 = vmatprep.mubr.msk.f32.mxu1 %vm1217_vm0, %v1218_v1  ;;  %957 = vmatpush3.bf16.msra.mxu1 %v956_v21  ;;  %v971_v53 = vpack.c.bf16 %v324_v51, %v323_v50  ;;  %v326_v55 = vld [vmem:[#allocation10 + $0xe8] sm:$0xff]  ;;  %v327_v57 = vld [vmem:[#allocation10 + $0xf0] sm:$0xff]  ;;  %v328_v58 = vld [vmem:[#allocation10 + $0xf8] sm:$0xff] }
  0x67   :  { %958 = vmatprep.subr.bf16.mxu1 %v1216_v0  ;;  %1006 = vmatprep.subr.bf16.mxu0 %v1216_v0  ;;  %v974_v56 = vpack.c.bf16 %v326_v55, %v325_v54  ;;  %v485_v59 = vld [vmem:[#allocation10 + $0x160] sm:$0xff]  ;;  %v977_v60 = vpack.c.bf16 %v328_v58, %v327_v57  ;;  %v486_v61 = vld [vmem:[#allocation10 + $0x168] sm:$0xff]  ;;  %v487_v63 = vld [vmem:[#allocation10 + $0x170] sm:$0xff] }
  0x68   :  { %905 = vmatprep.mubr.msk.f32.mxu0 %vm1217_vm0, %v1218_v1  ;;  %v1022_v62 = vpack.c.bf16 %v486_v61, %v485_v59  ;;  %v488_v2 = vld [vmem:[#allocation10 + $0x178] sm:$0xff]  ;;  %v688_v4 = vld [vmem:[%s1427_s3] ss:$0 sm:$0xff]  ;;  %v294_v8 = vld [vmem:[#allocation10 + $0x8] sm:$0xff] }
  0x69   :  { %798 = vmatmul.mubr.msk.f32.gmra.mrb[2].mxu1 %vm108_vm1, %v184_v27  ;;  %1008 = vmatpush3.bf16.msra.mxu0 %v1007_v26  ;;  %v1025_v3 = vpack.c.bf16 %v488_v2, %v487_v63  ;;  %v690_v5 = vld [vmem:[%s1429_s5] ss:$0 sm:$0xff]  ;;  %v295_v16 = vld [vmem:[#allocation10 + $0x10] sm:$0xff]  ;;  %v296_v18 = vld [vmem:[#allocation10 + $0x18] sm:$0xff] }
  0x6a   :  { %800 = vmatprep.mubr.msk.f32.mxu1 %vm1217_vm0, %v1218_v1  ;;  %960 = vmatpush3.bf16.msra.mxu1 %v959_v28  ;;  %v293_v7 = vld [vmem:[#allocation10] sm:$0xff]  ;;  %v565_v20 = vld [vmem:[#allocation10 + $0x188] sm:$0xff]  ;;  %v983_v25 = vpack.c.bf16 %v296_v18, %v295_v16  ;;  %v566_v30 = vld [vmem:[#allocation10 + $0x190] sm:$0xff] }
  0x6b   :  { %961 = vmatprep.subr.bf16.mxu1 %v1216_v0  ;;  %1009 = vmatprep.subr.bf16.mxu0 %v1216_v0  ;;  %v980_v15 = vpack.c.bf16 %v294_v8, %v293_v7  ;;  %v564_v19 = vld [vmem:[#allocation10 + $0x180] sm:$0xff]  ;;  %v298_v29 = vld [vmem:[#allocation10 + $0x28] sm:$0xff]  ;;  %v567_v31 = vld [vmem:[#allocation10 + $0x198] sm:$0xff] }
  0x6c   :  { %v1028_v26 = vpack.c.bf16 %v565_v20, %v564_v19  ;;  %v297_v27 = vld [vmem:[#allocation10 + $0x20] sm:$0xff]  ;;  %v1031_v38 = vpack.c.bf16 %v567_v31, %v566_v30  ;;  %v299_v39 = vld [vmem:[#allocation10 + $0x30] sm:$0xff]  ;;  %v569_v43 = vld [vmem:[#allocation10 + $0x1a8] sm:$0xff] }
  0x6d   :  { %801 = vmatmul.mubr.msk.f32.gmra.mrb[4].mxu1 %vm108_vm1, %v185_v34  ;;  %1011 = vmatpush3.bf16.msra.mxu0 %v1010_v33  ;;  %v986_v37 = vpack.c.bf16 %v298_v29, %v297_v27  ;;  %v568_v42 = vld [vmem:[#allocation10 + $0x1a0] sm:$0xff]  ;;  %v302_v48 = vld [vmem:[#allocation10 + $0x48] sm:$0xff]  ;;  %v570_v49 = vld [vmem:[#allocation10 + $0x1b0] sm:$0xff] }
  0x6e   :  { %963 = vmatpush3.bf16.msra.mxu1 %v962_v35  ;;  %1012 = vmatprep.subr.bf16.mxu0 %v1216_v0  ;;  %v571_v50 = vld [vmem:[#allocation10 + $0x1b8] sm:$0xff]  ;;  %v572_v54 = vld [vmem:[#allocation10 + $0x1c0] sm:$0xff]  ;;  %v573_v55 = vld [vmem:[#allocation10 + $0x1c8] sm:$0xff] }
  0x6f   :  { %964 = vmatprep.subr.bf16.mxu1 %v1216_v0  ;;  %835 = vmatprep.mubr.msk.f32.mxu1 %vm1217_vm0, %v1218_v1  ;;  %v1040_v57 = vpack.c.bf16 %v573_v55, %v572_v54  ;;  %v305_v58 = vld [vmem:[#allocation10 + $0x60] sm:$0xff]  ;;  %v306_v59 = vld [vmem:[#allocation10 + $0x68] sm:$0xff]  ;;  %v575_v61 = vld [vmem:[#allocation10 + $0x1d8] sm:$0xff] }
  0x70   :  { %v307_v2 = vld [vmem:[#allocation10 + $0x70] sm:$0xff] }
  0x71   :  { %1014 = vmatpush3.bf16.msra.mxu0 %v1013_v40  ;;  %v578_v8 = vld [vmem:[#allocation10 + $0x1f0] sm:$0xff] }
  0x72   :  { %966 = vmatpush3.bf16.msra.mxu1 %v965_v41  ;;  %1015 = vmatprep.subr.bf16.mxu0 %v1216_v0  ;;  %v300_v41 = vld [vmem:[#allocation10 + $0x38] sm:$0xff] }
  0x73   :  { %967 = vmatprep.subr.bf16.mxu1 %v1216_v0  ;;  %v989_v45 = vpack.c.bf16 %v300_v41, %v299_v39 }
  0x75   :  { %1017 = vmatpush3.bf16.msra.mxu0 %v1016_v46  ;;  %v1034_v46 = vpack.c.bf16 %v569_v43, %v568_v42 }
  0x76   :  { %969 = vmatpush3.bf16.msra.mxu1 %v968_v47  ;;  %1018 = vmatprep.subr.bf16.mxu0 %v1216_v0  ;;  %v301_v47 = vld [vmem:[#allocation10 + $0x40] sm:$0xff] }
  0x77   :  { %970 = vmatprep.subr.bf16.mxu1 %v1216_v0  ;;  %v992_v51 = vpack.c.bf16 %v302_v48, %v301_v47 }
  0x79   :  { %1020 = vmatpush3.bf16.msra.mxu0 %v1019_v52  ;;  %v1037_v52 = vpack.c.bf16 %v571_v50, %v570_v49 }
  0x7a   :  { %972 = vmatpush3.bf16.msra.mxu1 %v971_v53  ;;  %1021 = vmatprep.subr.bf16.mxu0 %v1216_v0  ;;  %v303_v53 = vld [vmem:[#allocation10 + $0x50] sm:$0xff] }
  0x7b   :  { %973 = vmatprep.subr.bf16.mxu1 %v1216_v0 }
  0x7d   :  { %1023 = vmatpush3.bf16.msra.mxu0 %v1022_v62  ;;  %v998_v62 = vpack.c.bf16 %v306_v59, %v305_v58 }
  0x7e   :  { %975 = vmatpush3.bf16.msra.mxu1 %v974_v56  ;;  %1024 = vmatprep.subr.bf16.mxu0 %v1216_v0 }
  0x7f   :  { %976 = vmatprep.subr.bf16.mxu1 %v1216_v0 }
  0x81   :  { %1026 = vmatpush3.bf16.msra.mxu0 %v1025_v3  ;;  %v308_v3 = vld [vmem:[#allocation10 + $0x78] sm:$0xff] }
  0x82   :  { %978 = vmatpush3.bf16.msra.mxu1 %v977_v60  ;;  %1027 = vmatprep.subr.bf16.mxu0 %v1216_v0  ;;  %v574_v60 = vld [vmem:[#allocation10 + $0x1d0] sm:$0xff] }
  0x83   :  { %979 = vmatprep.subr.bf16.mxu1 %v1216_v0  ;;  %v1043_v63 = vpack.c.bf16 %v575_v61, %v574_v60 }
 0x137   :  { %v178_v6 = vpop.f32.mrb[0].mxu0 }
 0x138   :  { %v179_v9 = vadd.f32 %v688_v4, %v178_v6  ;;  %v272_v10 = vpop.f32.mrb[0].mxu1  ;;  %v785_v11 = vpop.f32.mrb[1].mxu0  ;;  %v576_v4 = vld [vmem:[#allocation10 + $0x1e0] sm:$0xff]  ;;  %v1001_v6 = vpack.c.bf16 %v308_v3, %v307_v2 }
 0x139   :  { %v273_v12 = vadd.f32 %v690_v5, %v272_v10  ;;  %v796_v13 = vpop.f32.mrb[1].mxu1 }
 0x13a   :  { %v1381_v14 = vmax.f32 %v179_v9, 0.0  ;;  %v579_v9 = vld [vmem:[#allocation10 + $0x1f8] sm:$0xff] }
 0x13b   :  { %v286_v17 = vmax.f32 %v273_v12, 0.0  ;;  %v1049_v10 = vpack.c.bf16 %v579_v9, %v578_v8 }
 0x13c   :  { %v277_v21 = vpop.f32.mrb[2].mxu1  ;;  %v289_v22 = vmul.f32 %v1381_v14, %v1381_v14 }
 0x13d   :  { %v278_v23 = vadd.f32 %v690_v5, %v277_v21  ;;  %v799_v24 = vpop.f32.mrb[3].mxu1  ;;  %836 = vmatmul.mubr.f32.vlgmr.msra.gmra.mrb[6].mxu1 %v286_v17  ;;  %v309_v35 = vmul.f32 %v286_v17, %v286_v17  ;;  %v694_v21 = vld [vmem:[%s1431_s7] ss:$0 sm:$0xff]  ;;  %s1179_s7 = scalar_lea.vmem %s678_s24, 128 }
 0x13e   :  { %981 = vmatpush3.bf16.msra.mxu1 %v980_v15  ;;  %290 = vadd.xlane.f32.xlu0 %v289_v22  ;;  %p1180_p12 = scmp.ne.s32.totalorder %s678_s24, %s1179_s7  ;;  %p1185_p0 = scmp.lt.s32.totalorder %s1179_s7, %s1179_s7 }
 0x13f   :  { %v287_v28 = vmax.f32 %v278_v23, 0.0  ;;  %982 = vmatprep.subr.bf16.mxu1 %v1216_v0  ;;  %870 = vmatprep.mubr.msk.f32.mxu1 %vm1217_vm0, %v1218_v1 }
 0x140   :  { %v282_v32 = vpop.f32.mrb[4].mxu1  ;;  %p1186_p1 = por %p1185_p0, %p1184_p13 }
 0x141   :  { %v283_v33 = vadd.f32 %v690_v5, %v282_v32  ;;  %906 = vmatmul.mubr.f32.vlgmr.msra.gmra.mrb[2].mxu0 %v287_v28  ;;  %v469_v34 = vmul.f32 %v287_v28, %v287_v28  ;;  %v802_v36 = vpop.f32.mrb[5].mxu1  ;;  %v577_v5 = vld [vmem:[#allocation10 + $0x1e8] sm:$0xff] }
 0x142   :  { %984 = vmatpush3.bf16.msra.mxu1 %v983_v25  ;;  %1029 = vmatpush3.bf16.msra.mxu0 %v1028_v26  ;;  %v1046_v7 = vpack.c.bf16 %v577_v5, %v576_v4  ;;  %p1187_p2 = pnand %p1186_p1, %p1180_p12 }
 0x143   :  { %v1388_v40 = vmax.f32 %v283_v33, 0.0  ;;  %470 = vadd.xlane.f32.xlu1 %v469_v34  ;;  %310 = vadd.xlane.f32.xlu0 %v309_v35 }
 0x144   :  { %985 = vmatprep.subr.bf16.mxu1 %v1216_v0  ;;  %1030 = vmatprep.subr.bf16.mxu0 %v1216_v0 }
 0x145   :  { %v560_v44 = vmul.f32 %v1388_v40, %v1388_v40  ;;  %940 = vmatprep.mubr.msk.f32.mxu0 %vm1217_vm0, %v1218_v1  ;;  %v304_v1 = vld [vmem:[#allocation10 + $0x58] sm:$0xff] }
 0x146   :  { %987 = vmatpush3.bf16.msra.mxu1 %v986_v37  ;;  %1032 = vmatpush3.bf16.msra.mxu0 %v1031_v38  ;;  %v995_v56 = vpack.c.bf16 %v304_v1, %v303_v53 }
 0x147   :  { %561 = vadd.xlane.f32.xlu1 %v560_v44  ;;  %988 = vmatprep.subr.bf16.mxu1 %v1216_v0 }
 0x148   :  { %1033 = vmatprep.subr.bf16.mxu0 %v1216_v0 }
 0x14a   :  { %990 = vmatpush3.bf16.msra.mxu1 %v989_v45  ;;  %1035 = vmatpush3.bf16.msra.mxu0 %v1034_v46 }
 0x14b   :  { %991 = vmatprep.subr.bf16.mxu1 %v1216_v0  ;;  %1036 = vmatprep.subr.bf16.mxu0 %v1216_v0 }
 0x14e   :  { %993 = vmatpush3.bf16.msra.mxu1 %v992_v51  ;;  %1038 = vmatpush3.bf16.msra.mxu0 %v1037_v52 }
 0x14f   :  { %994 = vmatprep.subr.bf16.mxu1 %v1216_v0  ;;  %1039 = vmatprep.subr.bf16.mxu0 %v1216_v0 }
 0x152   :  { %996 = vmatpush3.bf16.msra.mxu1 %v995_v56  ;;  %1041 = vmatpush3.bf16.msra.mxu0 %v1040_v57 }
 0x153   :  { %997 = vmatprep.subr.bf16.mxu1 %v1216_v0  ;;  %1042 = vmatprep.subr.bf16.mxu0 %v1216_v0 }
 0x156   :  { %999 = vmatpush3.bf16.msra.mxu1 %v998_v62  ;;  %1044 = vmatpush3.bf16.msra.mxu0 %v1043_v63 }
 0x157   :  { %1000 = vmatprep.subr.bf16.mxu1 %v1216_v0  ;;  %1045 = vmatprep.subr.bf16.mxu0 %v1216_v0 }
 0x15a   :  { %1002 = vmatpush3.bf16.msra.mxu1 %v1001_v6  ;;  %1047 = vmatpush3.bf16.msra.mxu0 %v1046_v7 }
 0x15b   :  { %1048 = vmatprep.subr.bf16.mxu0 %v1216_v0 }
 0x15d   :  { %871 = vmatmul.mubr.f32.vlgmr.msra.gmra.mrb[6].mxu1 %v1381_v14 }
 0x15e   :  { %1050 = vmatpush3.bf16.msra.mxu0 %v1049_v10 }
 0x161   :  { %941 = vmatmul.mubr.f32.vlgmr.msra.gmra.mrb[2].mxu0 %v1388_v40 }
 0x1cb   :  { %v291_v11 = vpop.xlane.xlu0 %290 }
 0x1d0   :  { %v311_v12 = vpop.xlane.xlu0 %310  ;;  %v471_v13 = vpop.xlane.xlu1 %470 }
 0x1d1   :  { %v312_v15 = vadd.f32 %v311_v12, %v291_v11 }
 0x1d3   :  { %v472_v16 = vadd.f32 %v471_v13, %v312_v15 }
 0x1d4   :  { %v562_v17 = vpop.xlane.xlu1 %561 }
 0x1d5   :  { %v563_v20 = vadd.f32 %v562_v17, %v472_v16 }
 0x1d7   :  { %v658_v14 = vadd.f32 %v694_v21, %v563_v20 }
 0x230   :  { %v465_v18 = vpop.f32.mrb[6].mxu1 }
 0x231   :  { %v872_v19 = vpop.f32.mrb[7].mxu1 }
 0x234   :  { %v646_v22 = vpop.f32.mrb[2].mxu0 }
 0x235   :  { %v1051_v0 = vadd.f32 %v646_v22, %v465_v18  ;;  %v942_v23 = vpop.f32.mrb[3].mxu0 }
 0x237   :  { %v659_v24 = vmul.f32 2.0, %v1051_v0 }
 0x239   :  { %v660_v25 = vsub.f32 %v658_v14, %v659_v24 }
 0x23b   :  { %v661_v26 = vmax.f32 %v660_v25, 0.0 }
 0x23d   :  { %1067 = vrsqrt.f32 %v661_v26  ;;  %vm664_vm2 = vcmp.eq.f32.partialorder %v661_v26, inf  ;;  %v667_v29 = vand.u32 2147483648, %v661_v26  ;;  %vm666_vm3 = vcmp.eq.f32.partialorder %v661_v26, 0.0 }
 0x247   :  { %v1068_v27 = vpop.eup %1067 }
 0x248   :  { %v663_v28 = vmul.f32 %v1068_v27, %v661_v26 }
 0x24a   :  { %v665_v30 = vsel %vm664_vm2, %v661_v26, %v663_v28 }
 0x24b   :  { %v668_v31 = vsel %vm666_vm3, %v667_v29, %v665_v30 }
 0x24c   :  { %v669_v32 = vmul.f32 -0.1, %v668_v31 }
 0x24e   :  { %670 = vst [vmem:[#allocation11] sm:$0xff] %v669_v32 }
 0x24f   :  { %1190 = shalt.err (!%p1187_p2)
}
 0x250   :  { %s1191_s27 = scalar_lea.hbm %s1432_s8, 128 }
 0x251   :  { %p1192_p3 = scmp.ne.s32.totalorder %s1432_s8, %s1191_s27  ;;  %p1195_p4 = scmp.lt.u32.totalorder %s1191_s27, %s1432_s8 }
 0x253   :  { %p1197_p5 = pnand %p1195_p4, %p1192_p3 }
 0x255   :  { %1200 = shalt.err (!%p1197_p5)
}
 0x256   :  { %680 = dma.vmem_to_hbm [thread:$0]  %s678_s24, 128, %s1432_s8, [#allocation4]  }
 0x257   :  { %1207 = dma.done.wait [#allocation4], 128  }
 0x258   :  { %1208 = vsyncadd [#allocation4], 4294967168 }
 0x259   :  { %684 = vsyncpa [#allocation3], 1 }
 0x25a   :  { %685 = vsyncpa [#allocation6], 1 }
 0x25b   :  { %686 = vsyncpa [#allocation9], 1 }
 0x25c   :  { %687 = vsyncpa [#allocation4], 1 }

</bundles_post_ra>
